<compile_context>
chip_gen: v5e
topology: v5e:2x2
jax: 0.10.0
libtpu: 0.0.40
codegen_flags: <defaults>
</compile_context>

<pallas_src>
import functools

import jax
import jax.numpy as jnp
from jax import lax
from jax.experimental import pallas as pl
from jax.experimental.pallas import tpu as pltpu

KSIZES = (3, 4, 5)          # conv0 / conv1 / conv2 kernel sizes
KMAX = max(KSIZES)
LANE = 128


def _round_up(x, m):
    return ((x + m - 1) // m) * m


# ------------------------------- Pallas kernel -------------------------------
def cnn_kernel(x_ref, w_ref, b_ref, koff_ref, wp_ref, bp_ref, out_ref, *, T, CB):
    """One batch block: fused conv(3/4/5) + ReLU + time-max + projection.

    x_ref:    (Bb, Tp, E)      embeddings (compute dtype), Tp >= T + KMAX - 1
    w_ref:    (KMAX*E, Fp)     fused im2col conv weight (branches side by side)
    b_ref:    (1, Fp)  f32     fused conv bias
    koff_ref: (1, Fp)  i32     per-lane (1 - k); large negative for pad lanes
    wp_ref:   (Fp, Np)         projection weight (zero padded, lane dense)
    bp_ref:   (1, Np)  f32     projection bias
    out_ref:  (Bb, Np) f32     lane-dense output slab
    """
    Bb, Tp, E = x_ref.shape
    Fp = w_ref.shape[1]
    kmax = w_ref.shape[0] // E
    nchunks = Bb // CB
    cdtype = w_ref.dtype

    w = w_ref[...]                      # (KMAX*E, Fp), resident across chunks
    wp = wp_ref[...]                    # (Fp, Np)
    bias = b_ref[...]                   # (1, Fp)  f32
    bp = bp_ref[...]                    # (1, Np)  f32

    # Conv position t is valid for a branch of width k iff t < T - k + 1.
    # Invalid tail positions (they read padded rows) are zeroed BEFORE the
    # time-max; this is exact only because the ReLU output is >= 0.
    t_idx = lax.broadcasted_iota(jnp.int32, (T, Fp), 0)
    vmask = (t_idx < (T + koff_ref[...])).astype(jnp.float32)      # (T, Fp)

    def chunk(c, carry):
        # ~CB*T matmul rows live per chunk -> bounded vreg/VMEM pressure.
        xb = x_ref[pl.ds(c * CB, CB), :, :].astype(jnp.float32)    # (CB, Tp, E)
        xf = xb.reshape(CB * Tp, E)

        # im2col: lane-concat of the kmax time-shifted views. Shifts use an
        # aligned sublane roll (XLU) instead of misaligned slices; the wrap-around
        # rows land only in positions that are masked by vmask.
        views = []
        for dk in range(kmax):
            v = xf if dk == 0 else pltpu.roll(xf, shift=CB * Tp - dk, axis=0)
            views.append(v.reshape(CB, Tp, E)[:, :T, :])
        cols = jnp.concatenate(views, axis=-1)                     # (CB, T, kmax*E)
        cols = cols.reshape(CB * T, kmax * E).astype(cdtype)

        # single fused MXU pass for all three branches (K = kmax*E)
        acc = jnp.dot(cols, w, preferred_element_type=jnp.float32)  # (CB*T, Fp) f32
        h = jnp.maximum(acc + bias, 0.0)                             # bias + ReLU
        h = h.reshape(CB, T, Fp) * vmask[None]                       # mask invalid t
        feat = jnp.max(h, axis=1)                                    # (CB, Fp) f32

        out = jnp.dot(feat.astype(cdtype), wp,
                      preferred_element_type=jnp.float32) + bp       # (CB, Np) f32
        out_ref[pl.ds(c * CB, CB), :] = out
        return carry

    lax.fori_loop(0, nchunks, chunk, 0, unroll=True)


# ------------------------- one-time parameter packing ------------------------
def pack_params(params, *, compute_dtype=jnp.bfloat16):
    """Hoisted out of the per-call path: fused / padded / lane-dense weights."""
    E = params["embedding"].shape[1]
    F = params["b0"].shape[0]
    ntags = params["bp"].shape[0]
    Fp = max(LANE, _round_up(3 * F, LANE))
    Np = max(LANE, _round_up(ntags, LANE))

    w_flat = jnp.zeros((KMAX * E, Fp), jnp.float32)
    b_fused = jnp.zeros((1, Fp), jnp.float32)
    koff = jnp.full((1, Fp), -(10 ** 6), jnp.int32)   # pad lanes: never valid
    for j, k in enumerate(KSIZES):
        # torch Conv1d weight (F, E, k) -> im2col layout (k*E, F), row = dk*E + e
        w = jnp.transpose(params[f"w{j}"], (2, 1, 0)).reshape(k * E, F)
        w_flat = w_flat.at[: k * E, j * F:(j + 1) * F].set(w)
        b_fused = b_fused.at[0, j * F:(j + 1) * F].set(params[f"b{j}"])
        koff = koff.at[0, j * F:(j + 1) * F].set(1 - k)

    wp = jnp.zeros((Fp, Np), jnp.float32).at[: 3 * F, :ntags].set(params["wp"].T)
    bp = jnp.zeros((1, Np), jnp.float32).at[0, :ntags].set(params["bp"])

    return {
        "emb": params["embedding"].astype(compute_dtype),
        "w": w_flat.astype(compute_dtype),
        "b": b_fused,
        "koff": koff,
        "wp": wp.astype(compute_dtype),
        "bp": bp,
        "dims": (E, F, ntags, Fp, Np),
        "compute_dtype": compute_dtype,
    }


# ---------------------------------- wrapper -----------------------------------
def cnn_forward(words, masks, packed, *, batch_block=None):
    """Pallas forward. `masks` is accepted for parity but never used (as in PyTorch)."""
    del masks
    E, F, ntags, Fp, Np = packed["dims"]
    cdtype = packed["compute_dtype"]
    B, T = words.shape
    assert T >= KMAX, f"T={T} < largest conv kernel ({KMAX}); PyTorch Conv1d would fail"

    Tp = _round_up(T + KMAX - 1, 8)                     # padded time axis

    # batch blocking: ~2 MiB of x per grid step; >= 2 steps when B > 8 so the
    # "parallel" axis can shard across v7x's two TensorCores. Blocks stay well
    # under the v7x 64 MiB VMEM (x <= ~2 MiB, out <= ~1 MiB, weights ~0.1 MiB).
    if batch_block is not None:
        Bb = int(batch_block)
    elif B <= 8:
        Bb = B
    else:
        row_bytes = Tp * E * jnp.dtype(cdtype).itemsize
        Bb = min(B, max(8, (2 << 20) // max(row_bytes, 1)))
        Bb = min(Bb, max(8, (B + 1) // 2), 2048)
        Bb = max(8, (Bb // 8) * 8)
        nblk = -(-B // Bb)
        Bb = _round_up(-(-B // nblk), 8)                # rebalance, minimize padding
    nblk = -(-B // Bb)
    B_pad = nblk * Bb

    # in-kernel chunking: ~256 live matmul rows (CB*T) per chunk
    CB = max(1, min(Bb, 256 // max(T, 1)))
    while Bb % CB:
        CB -= 1

    # Embedding gather + padding fused into ONE take: pad positions use row 0
    # (any finite row works - padded positions are masked in-kernel before the max).
    # TODO(synk): for very large B*T move the gather in-kernel (scalar-prefetched
    #             ids + DMA gather from an HBM-resident table) to avoid the extra
    #             HBM round trip of the gathered activations.
    ids = jnp.zeros((B_pad, Tp), words.dtype).at[:B, :T].set(words)
    x = jnp.take(packed["emb"], ids, axis=0)            # (B_pad, Tp, E), compute dtype

    grid_spec = pltpu.PrefetchScalarGridSpec(
        num_scalar_prefetch=0,
        grid=(nblk,),
        in_specs=[
            pl.BlockSpec((Bb, Tp, E), lambda i: (i, 0, 0)),    # embeddings block
            pl.BlockSpec((KMAX * E, Fp), lambda i: (0, 0)),    # fused conv weight
            pl.BlockSpec((1, Fp), lambda i: (0, 0)),           # fused conv bias
            pl.BlockSpec((1, Fp), lambda i: (0, 0)),           # per-lane (1 - k)
            pl.BlockSpec((Fp, Np), lambda i: (0, 0)),          # projection W^T
            pl.BlockSpec((1, Np), lambda i: (0, 0)),           # projection bias
        ],
        out_specs=pl.BlockSpec((Bb, Np), lambda i: (i, 0)),
    )

    out = pl.pallas_call(
        functools.partial(cnn_kernel, T=T, CB=CB),
        out_shape=jax.ShapeDtypeStruct((B_pad, Np), jnp.float32),
        grid_spec=grid_spec,
        compiler_params=pltpu.CompilerParams(
            dimension_semantics=("parallel",)),        # batch blocks independent
    )(x, packed["w"], packed["b"], packed["koff"], packed["wp"], packed["bp"])
    return out[:B, :ntags]


# ----------------------------- pure-JAX reference -----------------------------
def ref_forward(words, params):
    emb = jnp.take(params["embedding"], words, axis=0)     # (B, T, E)
    xt = jnp.transpose(emb, (0, 2, 1))                     # (B, E, T) == NCW

    def conv1d(x, w, b):
        y = lax.conv_general_dilated(x, w, (1,), "VALID",
                                     dimension_numbers=("NCH", "OIH", "NCH"))
        return y + b[None, :, None]

    h0 = jnp.max(jax.nn.relu(conv1d(xt, params["w0"], params["b0"])), axis=2)
    h1 = jnp.max(jax.nn.relu(conv1d(xt, params["w1"], params["b1"])), axis=2)
    h2 = jnp.max(jax.nn.relu(conv1d(xt, params["w2"], params["b2"])), axis=2)
    feat = jnp.concatenate([h0, h1, h2], axis=1)           # (B, 3F)
    return feat @ params["wp"].T + params["bp"]


# ------------------------------------ main ------------------------------------
if __name__ == "__main__":
    nwords, emb_size, num_filters, ntags = 100, 32, 8, 5

    key = jax.random.PRNGKey(0)
    ks = jax.random.split(key, 12)
    lim = (6.0 / (num_filters * 3 + ntags)) ** 0.5         # xavier-uniform bound
    params = {
        "embedding": jax.random.normal(ks[0], (nwords, emb_size), jnp.float32) * 0.1,
        "w0": jax.random.normal(ks[1], (num_filters, emb_size, 3), jnp.float32) * 0.1,
        "b0": jax.random.normal(ks[2], (num_filters,), jnp.float32) * 0.1,
        "w1": jax.random.normal(ks[3], (num_filters, emb_size, 4), jnp.float32) * 0.1,
        "b1": jax.random.normal(ks[4], (num_filters,), jnp.float32) * 0.1,
        "w2": jax.random.normal(ks[5], (num_filters, emb_size, 5), jnp.float32) * 0.1,
        "b2": jax.random.normal(ks[6], (num_filters,), jnp.float32) * 0.1,
        "wp": jax.random.uniform(ks[7], (ntags, num_filters * 3), jnp.float32,
                                 minval=-lim, maxval=lim),
        "bp": jax.random.normal(ks[8], (ntags,), jnp.float32) * 0.1,
    }

    # ---- test 1: f32 MXU operands, tiny shapes (tight tolerance) ----
    B, T = 2, 16
    words = jax.random.randint(ks[9], (B, T), 0, nwords)
    masks = jnp.ones((B, T), jnp.float32)                  # interface parity only
    ref = ref_forward(words, params)

    packed_f32 = pack_params(params, compute_dtype=jnp.float32)
    out = cnn_forward(words, masks, packed_f32)
    jax.block_until_ready(out)
    assert out.shape == (B, ntags), out.shape
    assert jnp.allclose(out, ref, atol=1e-4, rtol=1e-4), (out, ref)

    # ---- test 2: bf16 MXU operands (default perf path), same inputs ----
    packed_bf16 = pack_params(params, compute_dtype=jnp.bfloat16)
    out_bf = cnn_forward(words, masks, packed_bf16)
    jax.block_until_ready(out_bf)
    assert jnp.allclose(out_bf, ref, atol=3e-2, rtol=3e-2), (out_bf, ref)

    # ---- test 3: multi-block grid + multi-chunk in-kernel loop + batch padding ----
    B2, T2 = 12, 40
    words2 = jax.random.randint(ks[10], (B2, T2), 0, nwords)
    out2 = cnn_forward(words2, None, packed_bf16)
    jax.block_until_ready(out2)
    ref2 = ref_forward(words2, params)
    assert out2.shape == (B2, ntags), out2.shape
    assert jnp.allclose(out2, ref2, atol=3e-2, rtol=3e-2), (out2, ref2)

    print("KERNEL_OK")
</pallas_src>

<mosaic_0001>
module attributes {stable_mosaic.version = 11 : i64} {
  func.func @cnn_kernel(%arg0: i32, %arg1: memref<2x24x32xf32, #tpu.memory_space<vmem>>, %arg2: memref<160x128xf32, #tpu.memory_space<vmem>>, %arg3: memref<1x128xf32, #tpu.memory_space<vmem>>, %arg4: memref<1x128xi32, #tpu.memory_space<vmem>>, %arg5: memref<128x128xf32, #tpu.memory_space<vmem>>, %arg6: memref<1x128xf32, #tpu.memory_space<vmem>>, %arg7: memref<2x128xf32, #tpu.memory_space<vmem>>) attributes {dimension_semantics = [#tpu.dimension_semantics<parallel>], iteration_bounds = array<i64: 1>, scalar_prefetch = 0 : i64, scratch_operands = 0 : i64, tpu.core_type = #tpu.core_type<tc>, window_params = [{transform_indices = @transform_0, window_bounds = array<i64: 2, 24, 32>}, {pipeline_mode = #tpu.pipeline_mode<synchronous>, transform_indices = @transform_1, window_bounds = array<i64: 160, 128>}, {pipeline_mode = #tpu.pipeline_mode<synchronous>, transform_indices = @transform_2, window_bounds = array<i64: 1, 128>}, {pipeline_mode = #tpu.pipeline_mode<synchronous>, transform_indices = @transform_3, window_bounds = array<i64: 1, 128>}, {pipeline_mode = #tpu.pipeline_mode<synchronous>, transform_indices = @transform_4, window_bounds = array<i64: 128, 128>}, {pipeline_mode = #tpu.pipeline_mode<synchronous>, transform_indices = @transform_5, window_bounds = array<i64: 1, 128>}, {transform_indices = @transform_6, window_bounds = array<i64: 2, 128>}]} {
    %c0 = arith.constant 0 : index
    %c0_0 = arith.constant 0 : index
    %0 = vector.load %arg2[%c0, %c0_0] : memref<160x128xf32, #tpu.memory_space<vmem>>, vector<160x128xf32>
    %c0_1 = arith.constant 0 : index
    %c0_2 = arith.constant 0 : index
    %1 = vector.load %arg5[%c0_1, %c0_2] : memref<128x128xf32, #tpu.memory_space<vmem>>, vector<128x128xf32>
    %c0_3 = arith.constant 0 : index
    %c0_4 = arith.constant 0 : index
    %2 = vector.load %arg3[%c0_3, %c0_4] : memref<1x128xf32, #tpu.memory_space<vmem>>, vector<1x128xf32>
    %c0_5 = arith.constant 0 : index
    %c0_6 = arith.constant 0 : index
    %3 = vector.load %arg6[%c0_5, %c0_6] : memref<1x128xf32, #tpu.memory_space<vmem>>, vector<1x128xf32>
    %4 = tpu.iota {dimensions = array<i32: 0>} : vector<16x128xi32>
    %c0_7 = arith.constant 0 : index
    %c0_8 = arith.constant 0 : index
    %5 = vector.load %arg4[%c0_7, %c0_8] : memref<1x128xi32, #tpu.memory_space<vmem>>, vector<1x128xi32>
    %c16_i32 = arith.constant 16 : i32
    %6 = vector.broadcast %c16_i32 : i32 to vector<1x128xi32>
    %7 = arith.addi %6, %5 : vector<1x128xi32>
    %8 = vector.broadcast %7 : vector<1x128xi32> to vector<16x128xi32>
    %9 = arith.cmpi slt, %4, %8 : vector<16x128xi32>
    %10 = arith.extui %9 : vector<16x128xi1> to vector<16x128xi32>
    %11 = arith.sitofp %10 : vector<16x128xi32> to vector<16x128xf32>
    %c0_i32 = arith.constant 0 : i32
    %c2_i32 = arith.constant 2 : i32
    %12 = arith.muli %c0_i32, %c2_i32 : i32
    %13 = arith.index_cast %12 : i32 to index
    %c0_9 = arith.constant 0 : index
    %c0_10 = arith.constant 0 : index
    %14 = vector.load %arg1[%13, %c0_9, %c0_10] : memref<2x24x32xf32, #tpu.memory_space<vmem>>, vector<2x24x32xf32>
    %15 = vector.shape_cast %14 : vector<2x24x32xf32> to vector<48x32xf32>
    %16 = vector.shape_cast %15 : vector<48x32xf32> to vector<2x24x32xf32>
    %17 = vector.extract_strided_slice %16 {offsets = [0, 0, 0], sizes = [2, 16, 32], strides = [1, 1, 1]} : vector<2x24x32xf32> to vector<2x16x32xf32>
    %c47_i32 = arith.constant 47 : i32
    %18 = tpu.dynamic_rotate %15 by %c47_i32 dim 0 : vector<48x32xf32>, i32 -> vector<48x32xf32>
    %19 = vector.shape_cast %18 : vector<48x32xf32> to vector<2x24x32xf32>
    %20 = vector.extract_strided_slice %19 {offsets = [0, 0, 0], sizes = [2, 16, 32], strides = [1, 1, 1]} : vector<2x24x32xf32> to vector<2x16x32xf32>
    %c46_i32 = arith.constant 46 : i32
    %21 = tpu.dynamic_rotate %15 by %c46_i32 dim 0 : vector<48x32xf32>, i32 -> vector<48x32xf32>
    %22 = vector.shape_cast %21 : vector<48x32xf32> to vector<2x24x32xf32>
    %23 = vector.extract_strided_slice %22 {offsets = [0, 0, 0], sizes = [2, 16, 32], strides = [1, 1, 1]} : vector<2x24x32xf32> to vector<2x16x32xf32>
    %c45_i32 = arith.constant 45 : i32
    %24 = tpu.dynamic_rotate %15 by %c45_i32 dim 0 : vector<48x32xf32>, i32 -> vector<48x32xf32>
    %25 = vector.shape_cast %24 : vector<48x32xf32> to vector<2x24x32xf32>
    %26 = vector.extract_strided_slice %25 {offsets = [0, 0, 0], sizes = [2, 16, 32], strides = [1, 1, 1]} : vector<2x24x32xf32> to vector<2x16x32xf32>
    %c44_i32 = arith.constant 44 : i32
    %27 = tpu.dynamic_rotate %15 by %c44_i32 dim 0 : vector<48x32xf32>, i32 -> vector<48x32xf32>
    %28 = vector.shape_cast %27 : vector<48x32xf32> to vector<2x24x32xf32>
    %29 = vector.extract_strided_slice %28 {offsets = [0, 0, 0], sizes = [2, 16, 32], strides = [1, 1, 1]} : vector<2x24x32xf32> to vector<2x16x32xf32>
    %30 = tpu.concatenate %17, %20, %23, %26, %29 in 2 : vector<2x16x32xf32>, vector<2x16x32xf32>, vector<2x16x32xf32>, vector<2x16x32xf32>, vector<2x16x32xf32> -> vector<2x16x160xf32>
    %31 = vector.shape_cast %30 : vector<2x16x160xf32> to vector<32x160xf32>
    %cst = arith.constant dense<0.000000e+00> : vector<32x128xf32>
    %32 = tpu.matmul %31, %0, %cst {dimension_numbers = #tpu.dot_dimension_numbers<[1], [0], [0], [1], [0, 0, 1, 1], [], []>} : vector<32x160xf32>, vector<160x128xf32>, vector<32x128xf32> -> vector<32x128xf32>
    %33 = vector.broadcast %2 : vector<1x128xf32> to vector<32x128xf32>
    %34 = arith.addf %32, %33 : vector<32x128xf32>
    %cst_11 = arith.constant 0.000000e+00 : f32
    %35 = vector.broadcast %cst_11 : f32 to vector<32x128xf32>
    %36 = arith.maximumf %34, %35 : vector<32x128xf32>
    %37 = vector.shape_cast %36 : vector<32x128xf32> to vector<2x16x128xf32>
    %38 = vector.shape_cast %11 : vector<16x128xf32> to vector<1x16x128xf32>
    %39 = vector.broadcast %38 : vector<1x16x128xf32> to vector<2x16x128xf32>
    %40 = arith.mulf %37, %39 : vector<2x16x128xf32>
    %cst_12 = arith.constant dense<0xFF800000> : vector<2x128xf32>
    %41 = vector.multi_reduction <maximumf>, %40, %cst_12 [1] : vector<2x16x128xf32> to vector<2x128xf32>
    %cst_13 = arith.constant dense<0.000000e+00> : vector<2x128xf32>
    %42 = tpu.matmul %41, %1, %cst_13 {dimension_numbers = #tpu.dot_dimension_numbers<[1], [0], [0], [1], [0, 0, 1, 1], [], []>} : vector<2x128xf32>, vector<128x128xf32>, vector<2x128xf32> -> vector<2x128xf32>
    %43 = vector.broadcast %3 : vector<1x128xf32> to vector<2x128xf32>
    %44 = arith.addf %42, %43 : vector<2x128xf32>
    %c2_i32_14 = arith.constant 2 : i32
    %45 = arith.muli %c0_i32, %c2_i32_14 : i32
    %46 = arith.index_cast %45 : i32 to index
    %c0_15 = arith.constant 0 : index
    %47 = vector.load %arg7[%46, %c0_15] : memref<2x128xf32, #tpu.memory_space<vmem>>, vector<2x128xf32>
    tpu.vector_store %arg7[%46, %c0_15], %44 {strides = array<i32>} : memref<2x128xf32, #tpu.memory_space<vmem>>, vector<2x128xf32>,
    %c1_i32 = arith.constant 1 : i32
    return
  }
  func.func @transform_0(%arg0: i32) -> (i32, i32, i32) {
    %c0_i32 = arith.constant 0 : i32
    %c0_i32_0 = arith.constant 0 : i32
    %c0_i32_1 = arith.constant 0 : i32
    return %arg0, %c0_i32, %c0_i32_0 : i32, i32, i32
  }
  func.func @transform_1(%arg0: i32) -> (i32, i32) {
    %c0_i32 = arith.constant 0 : i32
    %c0_i32_0 = arith.constant 0 : i32
    %c0_i32_1 = arith.constant 0 : i32
    return %c0_i32, %c0_i32_0 : i32, i32
  }
  func.func @transform_2(%arg0: i32) -> (i32, i32) {
    %c0_i32 = arith.constant 0 : i32
    %c0_i32_0 = arith.constant 0 : i32
    %c0_i32_1 = arith.constant 0 : i32
    return %c0_i32, %c0_i32_0 : i32, i32
  }
  func.func @transform_3(%arg0: i32) -> (i32, i32) {
    %c0_i32 = arith.constant 0 : i32
    %c0_i32_0 = arith.constant 0 : i32
    %c0_i32_1 = arith.constant 0 : i32
    return %c0_i32, %c0_i32_0 : i32, i32
  }
  func.func @transform_4(%arg0: i32) -> (i32, i32) {
    %c0_i32 = arith.constant 0 : i32
    %c0_i32_0 = arith.constant 0 : i32
    %c0_i32_1 = arith.constant 0 : i32
    return %c0_i32, %c0_i32_0 : i32, i32
  }
  func.func @transform_5(%arg0: i32) -> (i32, i32) {
    %c0_i32 = arith.constant 0 : i32
    %c0_i32_0 = arith.constant 0 : i32
    %c0_i32_1 = arith.constant 0 : i32
    return %c0_i32, %c0_i32_0 : i32, i32
  }
  func.func @transform_6(%arg0: i32) -> (i32, i32) {
    %c0_i32 = arith.constant 0 : i32
    %c0_i32_0 = arith.constant 0 : i32
    return %arg0, %c0_i32 : i32, i32
  }
}

</mosaic_0001>

<bundles_post_ra>
// kernel: tpu_custom_call.1
= control target key start
LH: loop header
LB: loop body
LE: loop exit
PB: predicated region body
PF: predicated region fallthrough
CT: control target
= control target key end

     0   :  { %11 = vsyncpa [#allocation3], 0  ;;  %s701_s0 = inlined_call_operand.hbm [shape: f32[2,24,32], index: 0, kind: input, shape index: {}]   ;;  %s702_s1 = inlined_call_operand.hbm [shape: f32[160,128], index: 1, kind: input, shape index: {}]   ;;  %s703_s2 = inlined_call_operand.vmem [shape: f32[1,128], index: 2, kind: input, shape index: {}]   ;;  %s704_s3 = inlined_call_operand.vmem [shape: s32[1,128], index: 3, kind: input, shape index: {}]   ;;  %s705_s4 = inlined_call_operand.hbm [shape: f32[128,128], index: 4, kind: input, shape index: {}]   ;;  %s706_s5 = inlined_call_operand.vmem [shape: f32[1,128], index: 5, kind: input, shape index: {}]   ;;  %s707_s6 = inlined_call_operand.hbm [shape: f32[2,128], index: 6, kind: output, shape index: {}]  }
   0x1   :  { %12 = vsyncpa [#allocation6], 0 }
   0x2   :  { %13 = vsyncpa [#allocation4], 0  ;;  %s31_s23 = sshll.u32 %s702_s1, 4  ;;  %s532_s24 = smov [#allocation5]   ;;  %s32_s23 = int_to_ptr.hbm [resolvable:$true] %s31_s23 }
   0x3   :  { %s33_s25 = sshll.u32 %s532_s24, 4  ;;  %s18_s28 = sshll.u32 %s701_s0, 4  ;;  %s34_s25 = int_to_ptr.vmem [resolvable:$true] %s33_s25  ;;  %s19_s28 = int_to_ptr.hbm [resolvable:$true] %s18_s28 }
   0x4   :  { %s533_s29 = smov 128   ;;  %s534_s30 = smov 8  }
   0x5   :  { %39 = dma.hbm_to_vmem [thread:$0]  %s32_s23, 2560, %s34_s25, [#allocation6], %s533_s29, %s533_s29, %s534_s30  }
   0x6   :  { %s535_s7 = smov [#allocation2]   ;;  %s48_s11 = sshll.u32 %s705_s4, 4  ;;  %s49_s11 = int_to_ptr.hbm [resolvable:$true] %s48_s11 }
   0x7   :  { %s20_s8 = sshll.u32 %s535_s7, 4  ;;  %s536_s1 = smov [#allocation7]   ;;  %s21_s8 = int_to_ptr.vmem [resolvable:$true] %s20_s8 }
   0x8   :  { %26 = dma.hbm_to_vmem [thread:$0]  %s19_s28, 768, %s21_s8, [#allocation3], %s533_s29, %s533_s29, %s534_s30  }
   0x9   :  { %s50_s12 = sshll.u32 %s536_s1, 4  ;;  %s51_s12 = int_to_ptr.vmem [resolvable:$true] %s50_s12 }
   0xa   :  { %56 = dma.hbm_to_vmem [thread:$0]  %s49_s11, 2048, %s51_s12, [#allocation6], %s533_s29, %s533_s29, %s534_s30  }
   0xb   :  { %526 = dma.done.wait [#allocation3], 768  }
   0xc   :  { %527 = vsyncadd [#allocation3], 4294966528 }
   0xd   :  { %528 = dma.done.wait [#allocation6], 4608  }
   0xe   :  { %529 = vsyncadd [#allocation6], 4294962688  ;;  %v109_v0 = vlaneseq  ;;  %v588_v2 = vld [vmem:[#allocation2] sm:$0xff]  ;;  %v590_v3 = vld [vmem:[#allocation2 + $0x8] sm:$0xff]  ;;  %s537_s0 = smov 96   ;;  %s538_s4 = smov 32  }
   0xf   :  { %v592_v4 = vld [vmem:[#allocation2 + $0x18] sm:$0xff]  ;;  %v596_v5 = vld [vmem:[#allocation2 + $0x20] sm:$0xff]  ;;  %v149_v6 = vrot.slane %v588_v2, 3  ;;  %v150_v7 = vrot.slane %v590_v3, 3  ;;  %v127_v9 = vrot.slane %v588_v2, 1  ;;  %v602_v10 = vld [vmem:[#allocation2 + $0x10] sm:$0xff] }
  0x10   :  { %v586_v1 = vshrl.u32 %v109_v0, 7  ;;  %v152_v8 = vrot.slane %v592_v4, 3  ;;  %v153_v11 = vrot.slane %v596_v5, 3  ;;  %v128_v12 = vrot.slane %v590_v3, 1  ;;  %v608_v15 = vld [vmem:[#allocation2 + $0x28] sm:$0xff]  ;;  %v85_v21 = vld [vmem:[#allocation5 + $0x70] sm:$0xff] }
  0x11   :  { %v130_v13 = vrot.slane %v592_v4, 1  ;;  %v131_v14 = vrot.slane %v596_v5, 1  ;;  %v86_v16 = vld [vmem:[#allocation5 + $0x78] sm:$0xff]  ;;  %v129_v18 = vrot.slane %v602_v10, 1  ;;  %v132_v19 = vrot.slane %v608_v15, 1  ;;  %v84_v28 = vld [vmem:[#allocation5 + $0x68] sm:$0xff] }
  0x12   :  { %vm155_vm0 = vcmp.lt.s32.totalorder %v586_v1, 5  ;;  %vm133_vm1 = vcmp.lt.s32.totalorder %v586_v1, 7  ;;  %v138_v20 = vrot.slane %v588_v2, 2  ;;  %249 = vmatpush.msra.mxu0 %v86_v16  ;;  %382 = vmatpush.msra.mxu3 %v86_v16  ;;  %v139_v25 = vrot.slane %v590_v3, 2  ;;  %v90_v29 = vld [vmem:[#allocation5 + $0x98] sm:$0xff]  ;;  %v83_v34 = vld [vmem:[#allocation5 + $0x60] sm:$0xff] }
  0x13   :  { %v159_v17 = vsel %vm155_vm0, %v149_v6, %v150_v7  ;;  %v157_v22 = vsel %vm155_vm0, %v152_v8, %v153_v11  ;;  %v135_v23 = vsel %vm133_vm1, %v130_v13, %v131_v14  ;;  %v137_v24 = vsel %vm133_vm1, %v127_v9, %v128_v12  ;;  %290 = vmatpush.msra.mxu1 %v90_v29  ;;  %v82_v39 = vld [vmem:[#allocation5 + $0x58] sm:$0xff]  ;;  %s539_s13 = smov 64   ;;  %v81_v43 = vld [vmem:[#allocation5 + $0x50] sm:$0xff]  ;;  %v80_v44 = vld [vmem:[#allocation5 + $0x48] sm:$0xff]  ;;  %s541_s18 = smov [#allocation8]  }
  0x14   :  { %v418_v26 = vpack.i.bf16 %v159_v17, %v157_v22  ;;  %v408_v27 = vpack.i.bf16 %v137_v24, %v135_v23  ;;  %vm144_vm2 = vcmp.lt.s32.totalorder %v586_v1, 6  ;;  %250 = vmatpush.msra.mxu0 %v85_v21  ;;  %v141_v30 = vrot.slane %v592_v4, 2  ;;  %383 = vmatpush.msra.mxu3 %v85_v21  ;;  %v79_v48 = vld [vmem:[#allocation5 + $0x40] sm:$0xff]  ;;  %v78_v49 = vld [vmem:[#allocation5 + $0x38] sm:$0xff]  ;;  %v77_v52 = vld [vmem:[#allocation5 + $0x30] sm:$0xff]  ;;  %s363_s19 = sshll.u32 %s541_s18, 4  ;;  %s364_s19 = int_to_ptr.vmem [resolvable:$true] %s363_s19 }
  0x15   :  { %v142_v31 = vrot.slane %v596_v5, 2  ;;  %v134_v32 = vsel %vm133_vm1, %v131_v14, %v132_v19  ;;  %v143_v33 = vrot.slane %v608_v15, 2  ;;  %v136_v35 = vsel %vm133_vm1, %v128_v12, %v129_v18  ;;  %v89_v53 = vld [vmem:[#allocation5 + $0x90] sm:$0xff]  ;;  %v76_v54 = vld [vmem:[#allocation5 + $0x28] sm:$0xff]  ;;  %v75_v56 = vld [vmem:[#allocation5 + $0x20] sm:$0xff]  ;;  %s365_s22 = sshll.u32 %s707_s6, 4  ;;  %s366_s22 = int_to_ptr.hbm [resolvable:$true] %s365_s22 }
  0x16   :  { %419 = vrot.lane.b32.xlu1 %v418_v26, %s537_s0  ;;  %409 = vrot.lane.b32.xlu0 %v408_v27, %s538_s4  ;;  %v148_v37 = vsel %vm144_vm2, %v138_v20, %v139_v25  ;;  %v423_v40 = vpack.i.bf16 %v136_v35, %v134_v32  ;;  %v154_v42 = vrot.slane %v608_v15, 3  ;;  %v140_v46 = vrot.slane %v602_v10, 2  ;;  %v88_v55 = vld [vmem:[#allocation5 + $0x88] sm:$0xff]  ;;  %v87_v59 = vld [vmem:[#allocation5 + $0x80] sm:$0xff]  ;;  %v74_v61 = vld [vmem:[#allocation5 + $0x18] sm:$0xff] }
  0x17   :  { %v146_v36 = vsel %vm144_vm2, %v141_v30, %v142_v31  ;;  %251 = vmatpush.msra.mxu0 %v84_v28  ;;  %384 = vmatpush.msra.mxu3 %v84_v28  ;;  %v145_v38 = vsel %vm144_vm2, %v142_v31, %v143_v33  ;;  %v151_v47 = vrot.slane %v602_v10, 3  ;;  %v160_v57 = vrot.slane %v588_v2, 4  ;;  %v73_v62 = vld [vmem:[#allocation5 + $0x10] sm:$0xff]  ;;  %v72_v63 = vld [vmem:[#allocation5 + $0x8] sm:$0xff]  ;;  %v71_v0 = vld [vmem:[#allocation5] sm:$0xff] }
  0x18   :  { %197 = vrot.lane.b32.xlu2 %v145_v38, %s539_s13  ;;  %v413_v41 = vpack.i.bf16 %v148_v37, %v146_v36  ;;  %v156_v45 = vsel %vm155_vm0, %v153_v11, %v154_v42  ;;  %v147_v50 = vsel %vm144_vm2, %v139_v25, %v140_v46  ;;  %291 = vmatpush.msra.mxu1 %v89_v53  ;;  %v161_v58 = vrot.slane %v590_v3, 4  ;;  %v98_v46 = vld [vmem:[#allocation7 + $0x38] sm:$0xff]  ;;  %v93_v53 = vld [vmem:[#allocation7 + $0x10] sm:$0xff] }
  0x19   :  { %252 = vmatpush.msra.mxu0 %v83_v34  ;;  %385 = vmatpush.msra.mxu3 %v83_v34  ;;  %v158_v51 = vsel %vm155_vm0, %v150_v7, %v151_v47  ;;  %vm166_vm3 = vcmp.lt.s32.totalorder %v586_v1, 4  ;;  %vm219_vm4 = vcmask 261120   ;;  %v162_v6 = vrot.slane %v602_v10, 4  ;;  %v97_v47 = vld [vmem:[#allocation7 + $0x30] sm:$0xff] }
  0x1a   :  { %292 = vmatpush.msra.mxu1 %v88_v55  ;;  %v170_v60 = vsel %vm166_vm3, %v160_v57, %v161_v58  ;;  %v163_v8 = vrot.slane %v592_v4, 4  ;;  %v164_v9 = vrot.slane %v596_v5, 4  ;;  %v165_v12 = vrot.slane %v608_v15, 4  ;;  %v92_v57 = vld [vmem:[#allocation7 + $0x8] sm:$0xff] }
  0x1b   :  { %253 = vmatpush.msra.mxu0 %v82_v39  ;;  %386 = vmatpush.msra.mxu3 %v82_v39  ;;  %v169_v7 = vsel %vm166_vm3, %v161_v58, %v162_v6  ;;  %vm224_vm5 = vcmask 523264   ;;  %vm229_vm6 = vcmask 785408   ;;  %v106_v39 = vld [vmem:[#allocation7 + $0x78] sm:$0xff]  ;;  %v91_v58 = vld [vmem:[#allocation7] sm:$0xff]  ;;  %vm334_vm9 = vcmask 1041409  }
  0x1c   :  { %293 = vmatpush.msra.mxu1 %v87_v59  ;;  %v168_v11 = vsel %vm166_vm3, %v163_v8, %v164_v9  ;;  %v167_v10 = vsel %vm166_vm3, %v164_v9, %v165_v12  ;;  %337 = vmatpush.msra.mxu2 %v106_v39  ;;  %v540_v12 = vmov 0.0  }
  0x1d   :  { %254 = vmatpush.msra.mxu0 %v81_v43  ;;  %387 = vmatpush.msra.mxu3 %v81_v43  ;;  %v101_v43 = vld [vmem:[#allocation7 + $0x50] sm:$0xff] }
  0x1e   :  { %424 = vrot.lane.b32.xlu1 %v423_v40, %s538_s4  ;;  %414 = vrot.lane.b32.xlu0 %v413_v41, %s539_s13  ;;  %v105_v40 = vld [vmem:[#allocation7 + $0x70] sm:$0xff]  ;;  %v102_v41 = vld [vmem:[#allocation7 + $0x58] sm:$0xff] }
  0x1f   :  { %255 = vmatpush.msra.mxu0 %v80_v44  ;;  %388 = vmatpush.msra.mxu3 %v80_v44  ;;  %v100_v44 = vld [vmem:[#allocation7 + $0x48] sm:$0xff] }
  0x20   :  { %213 = vrot.lane.b32.xlu2 %v156_v45, %s537_s0  ;;  %378 = vmatmul.msk.f32.vlgmr.msra.gmra.mxu1 %vm219_vm4, %v170_v60  ;;  %v99_v45 = vld [vmem:[#allocation7 + $0x40] sm:$0xff] }
  0x21   :  { %256 = vmatpush.msra.mxu0 %v79_v48  ;;  %389 = vmatpush.msra.mxu3 %v79_v48 }
  0x22   :  { %338 = vmatpush.msra.mxu2 %v105_v40 }
  0x23   :  { %257 = vmatpush.msra.mxu0 %v78_v49  ;;  %390 = vmatpush.msra.mxu3 %v78_v49  ;;  %v96_v49 = vld [vmem:[#allocation7 + $0x28] sm:$0xff] }
  0x25   :  { %258 = vmatpush.msra.mxu0 %v77_v52  ;;  %391 = vmatpush.msra.mxu3 %v77_v52  ;;  %v112_v52 = vld [vmem:[%s704_s3] sm:$0x1] }
  0x26   :  { %193 = vrot.lane.b32.xlu0 %v147_v50, %s539_s13  ;;  %209 = vrot.lane.b32.xlu1 %v158_v51, %s537_s0  ;;  %v95_v50 = vld [vmem:[#allocation7 + $0x20] sm:$0xff]  ;;  %v94_v51 = vld [vmem:[#allocation7 + $0x18] sm:$0xff] }
  0x27   :  { %259 = vmatpush.msra.mxu0 %v76_v54  ;;  %392 = vmatpush.msra.mxu3 %v76_v54  ;;  %v428_v54 = vld [vmem:[%s703_s2] ss:$0 sm:$0xff] }
  0x28   :  { %379 = vmatmul.msk.f32.gmra.mxu1 %vm219_vm4, %v169_v7 }
  0x29   :  { %260 = vmatpush.msra.mxu0 %v75_v56  ;;  %393 = vmatpush.msra.mxu3 %v75_v56  ;;  %v113_v56 = vadd.s32 16, %v112_v52 }
  0x2b   :  { %261 = vmatpush.msra.mxu0 %v74_v61  ;;  %394 = vmatpush.msra.mxu3 %v74_v61  ;;  %v114_v60 = vperm.slane %v113_v56, 0 }
  0x2d   :  { %262 = vmatpush.msra.mxu0 %v73_v62  ;;  %395 = vmatpush.msra.mxu3 %v73_v62  ;;  %v111_v62 = vadd.s32 8, %v586_v1  ;;  %vm115_vm7 = vcmp.lt.s32.totalorder %v586_v1, %v114_v60 }
  0x2f   :  { %263 = vmatpush.msra.mxu0 %v72_v63  ;;  %396 = vmatpush.msra.mxu3 %v72_v63  ;;  %vm116_vm8 = vcmp.lt.s32.totalorder %v111_v62, %v114_v60 }
  0x30   :  { %380 = vmatmul.msk.f32.gmra.mxu1 %vm219_vm4, %v168_v11 }
  0x31   :  { %264 = vmatpush.msra.mxu0 %v71_v0  ;;  %397 = vmatpush.msra.mxu3 %v71_v0 }
  0x38   :  { %381 = vmatmul.msk.f32.gmra.mxu1 %vm219_vm4, %v167_v10  ;;  %v376_v10 = vsel %vm115_vm7, 1.0, %v540_v12 }
  0x72   :  { %v198_v18 = vpop.permute.xlu2 %197 }
  0x7a   :  { %v214_v35 = vpop.permute.xlu2 %213 }
  0x88   :  { %v420_v13 = vpop.permute.xlu1 %419  ;;  %v410_v14 = vpop.permute.xlu0 %409 }
  0x89   :  { %v412_v16 = vunpack.i.h.bf16 %v410_v14  ;;  %v411_v17 = vunpack.i.l.bf16 %v410_v14  ;;  %v422_v21 = vunpack.i.h.bf16 %v420_v13  ;;  %v421_v22 = vunpack.i.l.bf16 %v420_v13 }
  0x8a   :  { %v377_v13 = vsel %vm116_vm8, 1.0, %v540_v12 }
  0x8b   :  { %v220_v26 = vsel %vm219_vm4, %v588_v2, %v412_v16  ;;  %v222_v27 = vsel %vm219_vm4, %v592_v4, %v411_v17 }
  0x90   :  { %v425_v19 = vpop.permute.xlu1 %424  ;;  %v415_v20 = vpop.permute.xlu0 %414 }
  0x91   :  { %v417_v23 = vunpack.i.h.bf16 %v415_v20  ;;  %v416_v24 = vunpack.i.l.bf16 %v415_v20  ;;  %v427_v25 = vunpack.i.h.bf16 %v425_v19  ;;  %v426_v15 = vunpack.i.l.bf16 %v425_v19 }
  0x93   :  { %v225_v28 = vsel %vm224_vm5, %v220_v26, %v417_v23  ;;  %v227_v29 = vsel %vm224_vm5, %v222_v27, %v416_v24  ;;  %v221_v32 = vsel %vm219_vm4, %v590_v3, %v427_v25  ;;  %v223_v33 = vsel %vm219_vm4, %v596_v5, %v426_v15  ;;  %v104_v3 = vld [vmem:[#allocation7 + $0x68] sm:$0xff]  ;;  %v103_v5 = vld [vmem:[#allocation7 + $0x60] sm:$0xff] }
  0x94   :  { %v230_v30 = vsel %vm229_vm6, %v225_v28, %v422_v21  ;;  %v232_v31 = vsel %vm229_vm6, %v227_v29, %v421_v22  ;;  %v228_v36 = vsel %vm224_vm5, %v223_v33, %v198_v18  ;;  %339 = vmatpush.msra.mxu2 %v104_v3 }
  0x95   :  { %265 = vmatmul.f32.vlgmr.msra.gmra.mxu0 %v230_v30  ;;  %271 = vmatmul.f32.vlgmr.msra.gmra.mxu3 %v232_v31  ;;  %v233_v38 = vsel %vm229_vm6, %v228_v36, %v214_v35 }
  0x96   :  { %340 = vmatpush.msra.mxu2 %v103_v5 }
  0x98   :  { %v194_v2 = vpop.permute.xlu0 %193  ;;  %v210_v34 = vpop.permute.xlu1 %209  ;;  %341 = vmatpush.msra.mxu2 %v102_v41 }
  0x99   :  { %v226_v4 = vsel %vm224_vm5, %v221_v32, %v194_v2 }
  0x9a   :  { %v231_v37 = vsel %vm229_vm6, %v226_v4, %v210_v34  ;;  %342 = vmatpush.msra.mxu2 %v101_v43 }
  0x9c   :  { %343 = vmatpush.msra.mxu2 %v100_v44 }
  0x9d   :  { %268 = vmatmul.f32.gmra.mxu0 %v231_v37  ;;  %274 = vmatmul.f32.gmra.mxu3 %v233_v38  ;;  %v295_v42 = vpop.f32.mrf.mxu1  ;;  %v429_v38 = vld [vmem:[%s706_s5] ss:$0 sm:$0xff] }
  0x9e   :  { %344 = vmatpush.msra.mxu2 %v99_v45 }
  0xa0   :  { %345 = vmatpush.msra.mxu2 %v98_v46 }
  0xa2   :  { %346 = vmatpush.msra.mxu2 %v97_v47 }
  0xa4   :  { %347 = vmatpush.msra.mxu2 %v96_v49 }
  0xa5   :  { %v298_v48 = vpop.f32.mrf.mxu1 }
  0xa6   :  { %348 = vmatpush.msra.mxu2 %v95_v50 }
  0xa8   :  { %349 = vmatpush.msra.mxu2 %v94_v51 }
  0xaa   :  { %350 = vmatpush.msra.mxu2 %v93_v53 }
  0xac   :  { %351 = vmatpush.msra.mxu2 %v92_v57 }
  0xad   :  { %v301_v61 = vpop.f32.mrf.mxu1 }
  0xae   :  { %352 = vmatpush.msra.mxu2 %v91_v58 }
  0xb5   :  { %v304_v18 = vpop.f32.mrf.mxu1 }
 0x112   :  { %v266_v55 = vpop.f32.mrf.mxu0 }
 0x113   :  { %v267_v59 = vadd.f32 %v428_v54, %v266_v55 }
 0x115   :  { %v296_v0 = vadd.f32 %v295_v42, %v267_v59 }
 0x117   :  { %v307_v9 = vmax.f32 %v296_v0, 0.0 }
 0x118   :  { %v272_v63 = vpop.f32.mrf.mxu3 }
 0x119   :  { %v273_v7 = vadd.f32 %v428_v54, %v272_v63  ;;  %v311_v19 = vmul.f32 %v376_v10, %v307_v9 }
 0x11a   :  { %v269_v6 = vpop.f32.mrf.mxu0 }
 0x11b   :  { %v270_v8 = vadd.f32 %v428_v54, %v269_v6  ;;  %v302_v16 = vadd.f32 %v301_v61, %v273_v7 }
 0x11d   :  { %v299_v11 = vadd.f32 %v298_v48, %v270_v8  ;;  %v309_v22 = vmax.f32 %v302_v16, 0.0 }
 0x11f   :  { %v308_v14 = vmax.f32 %v299_v11, 0.0  ;;  %v313_v15 = vmul.f32 %v376_v10, %v309_v22 }
 0x120   :  { %v275_v17 = vpop.f32.mrf.mxu3 }
 0x121   :  { %v276_v20 = vadd.f32 %v428_v54, %v275_v17  ;;  %v312_v21 = vmul.f32 %v377_v13, %v308_v14 }
 0x123   :  { %v305_v23 = vadd.f32 %v304_v18, %v276_v20  ;;  %v315_v24 = vmax.f32 %v311_v19, %v312_v21 }
 0x125   :  { %v310_v25 = vmax.f32 %v305_v23, 0.0  ;;  %v316_v1 = vrot.slane %v315_v24, 4 }
 0x127   :  { %v314_v26 = vmul.f32 %v377_v13, %v310_v25  ;;  %v317_v27 = vmax.f32 %v315_v24, %v316_v1 }
 0x129   :  { %v322_v28 = vmax.f32 %v313_v15, %v314_v26  ;;  %v318_v29 = vrot.slane %v317_v27, 2 }
 0x12b   :  { %v323_v30 = vrot.slane %v322_v28, 4  ;;  %v319_v32 = vmax.f32 %v317_v27, %v318_v29 }
 0x12d   :  { %v324_v31 = vmax.f32 %v322_v28, %v323_v30  ;;  %v320_v2 = vrot.slane %v319_v32, 1 }
 0x12f   :  { %v325_v33 = vrot.slane %v324_v31, 2  ;;  %v321_v4 = vmax.f32 %v319_v32, %v320_v2 }
 0x131   :  { %v326_v34 = vmax.f32 %v324_v31, %v325_v33 }
 0x133   :  { %v327_v35 = vrot.slane %v326_v34, 1 }
 0x135   :  { %v328_v36 = vmax.f32 %v326_v34, %v327_v35 }
 0x137   :  { %v335_v37 = vsel %vm334_vm9, %v328_v36, %v321_v4 }
 0x138   :  { %353 = vmatmul.f32.vlgmr.msra.gmra.mxu2 %v335_v37 }
 0x1bb   :  { %v354_v39 = vpop.f32.mrf.mxu2 }
 0x1bc   :  { %v355_v40 = vadd.f32 %v429_v38, %v354_v39 }
 0x1be   :  { %357 = vst [vmem:[#allocation8] sm:$0x3] %v355_v40 }
 0x1bf   :  { %368 = dma.vmem_to_hbm [thread:$0]  %s364_s19, 32, %s366_s22, [#allocation4]  }
 0x1c0   :  { %530 = dma.done.wait [#allocation4], 32  }
 0x1c1   :  { %531 = vsyncadd [#allocation4], 4294967264 }
 0x1c2   :  { %373 = vsyncpa [#allocation3], 1 }
 0x1c3   :  { %374 = vsyncpa [#allocation6], 1 }
 0x1c4   :  { %375 = vsyncpa [#allocation4], 1 }

</bundles_post_ra>
